<compile_context>
chip_gen: v5e
topology: v5e:2x2
jax: 0.10.0
libtpu: 0.0.40
codegen_flags: <defaults>
</compile_context>

<pallas_src>
import functools
import math

import jax
import jax.numpy as jnp
from jax.experimental import pallas as pl
from jax.experimental.pallas import tpu as pltpu


_TM_MAX = 1024                       # safe across v5e/v6e/v7x VMEM budgets
_VMEM_LIMIT = 32 * 1024 * 1024       # explicit scoped-VMEM cap (fits all gens)


def _round_up(x, m):
    return (x + m - 1) // m * m


def _choose_tm(m):
    """Pick an M tile (multiple of 8) and the padded M extent."""
    if m <= _TM_MAX:
        tm = _round_up(m, 8)
        return tm, tm
    mp = _round_up(m, _TM_MAX)
    return _TM_MAX, mp


def _pad2d(a, rows, cols):
    r, c = a.shape
    return jnp.pad(a, ((0, rows - r), (0, cols - c)))


# ---------------------------------------------------------------------------
# Pallas kernels
# ---------------------------------------------------------------------------
def _conv_mm_kernel(x_ref, w_ref, b_ref, o_ref, *, relu_out):
    """(TM, Kp) bf16 @ (Kp, Np) bf16 -> f32 acc, +bias, optional ReLU."""
    acc = jnp.dot(x_ref[...], w_ref[...], preferred_element_type=jnp.float32)
    acc = acc + b_ref[...]
    if relu_out:
        acc = jnp.maximum(acc, 0.0)
    o_ref[...] = acc.astype(o_ref.dtype)


def _resblock_kernel(p_ref, res_ref, w1_ref, b1_ref, w2_ref, b2_ref, o_ref,
                     *, relu_out):
    """Fused ResBlock tile:
       relu(patches) @ W1 + b1 -> relu -> @ W2 + b2 + residual -> (relu)."""
    p = jnp.maximum(p_ref[...], 0)                       # pre-activation ReLU
    t = jnp.dot(p, w1_ref[...], preferred_element_type=jnp.float32)
    t = jnp.maximum(t + b1_ref[...], 0.0)
    t = t.astype(jnp.bfloat16)                           # bf16 MXU path
    acc = jnp.dot(t, w2_ref[...], preferred_element_type=jnp.float32)
    acc = acc + b2_ref[...] + res_ref[...].astype(jnp.float32)
    if relu_out:
        acc = jnp.maximum(acc, 0.0)
    o_ref[...] = acc.astype(o_ref.dtype)


# ---------------------------------------------------------------------------
# Glue: im2col patch extraction (plain-JAX reshape/slice work)
# ---------------------------------------------------------------------------
def _im2col(x_nhwc, kh, kw, stride, pad):
    x = jnp.pad(x_nhwc, ((0, 0), (pad, pad), (pad, pad), (0, 0)))
    B, H, W, C = x.shape
    Ho = (H - kh) // stride + 1
    Wo = (W - kw) // stride + 1
    patches = []
    for i in range(kh):
        for j in range(kw):
            patches.append(x[:, i:i + Ho * stride:stride, j:j + Wo * stride:stride, :])
    p = jnp.concatenate(patches, axis=-1)                # (B, Ho, Wo, kh*kw*C)
    return p.reshape(B * Ho * Wo, kh * kw * C), (B, Ho, Wo)


def _weight_matrix(w_oihw):
    """OIHW -> (KH*KW*Cin, Cout), matching im2col (kh, kw, cin) ordering."""
    Cout, Cin, KH, KW = w_oihw.shape
    return jnp.transpose(w_oihw, (2, 3, 1, 0)).reshape(KH * KW * Cin, Cout)


def _compiler_params():
    return pltpu.CompilerParams(
        dimension_semantics=("parallel",),
        vmem_limit_bytes=_VMEM_LIMIT,
    )


# ---------------------------------------------------------------------------
# Conv2d (+ fused output ReLU) via grid-tiled Pallas matmul
# ---------------------------------------------------------------------------
def conv2d_pallas(x_nhwc, w_oihw, b, stride, pad, relu_out=False):
    Cout, Cin, KH, KW = w_oihw.shape
    patches, (B, Ho, Wo) = _im2col(x_nhwc, KH, KW, stride, pad)   # bf16 (M, K)
    M, K = patches.shape
    Kp = _round_up(K, 128)
    Np = _round_up(Cout, 128)
    TM, Mp = _choose_tm(M)

    patches = _pad2d(patches.astype(jnp.bfloat16), Mp, Kp)
    wmat = _pad2d(_weight_matrix(w_oihw), Kp, Np).astype(jnp.bfloat16)
    bmat = _pad2d(b.reshape(1, Cout).astype(jnp.float32), 1, Np)

    grid = (pl.cdiv(Mp, TM),)
    out = pl.pallas_call(
        functools.partial(_conv_mm_kernel, relu_out=relu_out),
        out_shape=jax.ShapeDtypeStruct((Mp, Np), jnp.bfloat16),
        grid=grid,
        in_specs=[
            pl.BlockSpec((TM, Kp), lambda i: (i, 0)),    # patches tile
            pl.BlockSpec((Kp, Np), lambda i: (0, 0)),    # full weight
            pl.BlockSpec((1, Np), lambda i: (0, 0)),     # bias row
        ],
        out_specs=pl.BlockSpec((TM, Np), lambda i: (i, 0)),
        compiler_params=_compiler_params(),
    )(patches, wmat, bmat)

    return out[:M, :Cout].reshape(B, Ho, Wo, Cout)


# ---------------------------------------------------------------------------
# Fused ResBlock: relu -> 3x3 conv -> relu -> 1x1 conv -> +x -> (relu)
# ---------------------------------------------------------------------------
def resblock_pallas(x_nhwc, w1, b1, w2, b2, relu_out=False):
    B, H, W, C = x_nhwc.shape
    R = w1.shape[0]                                       # n_res_channel
    patches, _ = _im2col(x_nhwc, 3, 3, 1, 1)              # (M, 9C), bf16
    M, K1 = patches.shape
    K1p = _round_up(K1, 128)
    Rp = _round_up(R, 128)
    Cp = _round_up(C, 128)
    TM, Mp = _choose_tm(M)

    patches = _pad2d(patches.astype(jnp.bfloat16), Mp, K1p)
    resid = _pad2d(x_nhwc.reshape(M, C).astype(jnp.bfloat16), Mp, Cp)
    w1m = _pad2d(_weight_matrix(w1), K1p, Rp).astype(jnp.bfloat16)
    b1m = _pad2d(b1.reshape(1, R).astype(jnp.float32), 1, Rp)
    w2m = _pad2d(_weight_matrix(w2), Rp, Cp).astype(jnp.bfloat16)
    b2m = _pad2d(b2.reshape(1, C).astype(jnp.float32), 1, Cp)

    grid = (pl.cdiv(Mp, TM),)
    out = pl.pallas_call(
        functools.partial(_resblock_kernel, relu_out=relu_out),
        out_shape=jax.ShapeDtypeStruct((Mp, Cp), jnp.bfloat16),
        grid=grid,
        in_specs=[
            pl.BlockSpec((TM, K1p), lambda i: (i, 0)),   # 3x3 im2col patches
            pl.BlockSpec((TM, Cp), lambda i: (i, 0)),    # residual tile (bf16)
            pl.BlockSpec((K1p, Rp), lambda i: (0, 0)),   # W1
            pl.BlockSpec((1, Rp), lambda i: (0, 0)),     # b1
            pl.BlockSpec((Rp, Cp), lambda i: (0, 0)),    # W2
            pl.BlockSpec((1, Cp), lambda i: (0, 0)),     # b2
        ],
        out_specs=pl.BlockSpec((TM, Cp), lambda i: (i, 0)),
        compiler_params=_compiler_params(),
    )(patches, resid, w1m, b1m, w2m, b2m)

    return out[:M, :C].reshape(B, H, W, C)


# ---------------------------------------------------------------------------
# Parameter init (mirrors nn.Conv2d default init shapes, deterministic)
# ---------------------------------------------------------------------------
def _init_conv(key, cin, cout, k):
    kw_, kb_ = jax.random.split(key)
    fan_in = cin * k * k
    bound = 1.0 / math.sqrt(fan_in)
    w = jax.random.uniform(kw_, (cout, cin, k, k), jnp.float32, -bound, bound)
    b = jax.random.uniform(kb_, (cout,), jnp.float32, -bound, bound)
    return w, b


def init_encoder_params(key, in_channel, channel, n_res_block, n_res_channel, stride):
    keys = iter(jax.random.split(key, 8 + 2 * max(n_res_block, 1)))
    if stride == 8:
        specs = [(in_channel, channel // 4, 4, 2, 1),
                 (channel // 4, channel // 2, 4, 2, 1),
                 (channel // 2, channel, 4, 2, 1),
                 (channel, channel, 3, 1, 1)]
    elif stride == 4:
        specs = [(in_channel, channel // 2, 4, 2, 1),
                 (channel // 2, channel, 4, 2, 1),
                 (channel, channel, 3, 1, 1)]
    elif stride == 2:
        specs = [(in_channel, channel // 2, 4, 2, 1),
                 (channel // 2, channel, 3, 1, 1)]
    else:
        raise ValueError("stride must be 2, 4 or 8")
    stem = []
    for cin, cout, k, s, p in specs:
        w, b = _init_conv(next(keys), cin, cout, k)
        stem.append((w, b, s, p))
    res = []
    for _ in range(n_res_block):
        w1, b1 = _init_conv(next(keys), channel, n_res_channel, 3)
        w2, b2 = _init_conv(next(keys), n_res_channel, channel, 1)
        res.append(((w1, b1), (w2, b2)))
    return {'stem': stem, 'res': res}


# ---------------------------------------------------------------------------
# Encoder forward (Pallas) and pure-JAX f32 reference
# ---------------------------------------------------------------------------
def encoder_forward_pallas(x_nchw, params):
    # NCHW -> NHWC, keep inter-layer activations in bf16 (MXU-native, half HBM).
    x = jnp.transpose(x_nchw, (0, 2, 3, 1)).astype(jnp.bfloat16)
    stem, res = params['stem'], params['res']
    n_stem, n_res = len(stem), len(res)
    for idx, (w, b, s, p) in enumerate(stem):
        # explicit nn.ReLU follows every stem conv except the last; if there are
        # no ResBlocks, the Encoder's trailing ReLU fuses into the last stem conv.
        relu_out = (idx < n_stem - 1) or (n_res == 0)
        x = conv2d_pallas(x, w, b, s, p, relu_out=relu_out)
    for ridx, ((w1, b1), (w2, b2)) in enumerate(res):
        last = (ridx == n_res - 1)    # trailing Encoder ReLU fused after the add
        x = resblock_pallas(x, w1, b1, w2, b2, relu_out=last)
    return jnp.transpose(x, (0, 3, 1, 2)).astype(jnp.float32)   # NHWC -> NCHW


def _ref_conv(x, w, b, stride, pad):
    y = jax.lax.conv_general_dilated(
        x, w, window_strides=(stride, stride),
        padding=[(pad, pad), (pad, pad)],
        dimension_numbers=('NCHW', 'OIHW', 'NCHW'))
    return y + b[None, :, None, None]


def encoder_forward_ref(x, params):
    stem, res = params['stem'], params['res']
    n_stem = len(stem)
    for idx, (w, b, s, p) in enumerate(stem):
        x = _ref_conv(x, w, b, s, p)
        if idx < n_stem - 1:
            x = jnp.maximum(x, 0.0)
    for (w1, b1), (w2, b2) in res:
        h = jnp.maximum(x, 0.0)
        h = _ref_conv(h, w1, b1, 1, 1)
        h = jnp.maximum(h, 0.0)
        h = _ref_conv(h, w2, b2, 1, 0)
        x = x + h
    return jnp.maximum(x, 0.0)


if __name__ == "__main__":
    key = jax.random.PRNGKey(0)
    kx, kp = jax.random.split(key)

    B, in_channel, H, W = 2, 3, 16, 16
    channel, n_res_block, n_res_channel, stride = 32, 2, 8, 4

    x = jax.random.normal(kx, (B, in_channel, H, W), jnp.float32)
    params = init_encoder_params(kp, in_channel, channel, n_res_block,
                                 n_res_channel, stride)

    out = encoder_forward_pallas(x, params)
    out = jax.block_until_ready(out)

    assert out.shape == (B, channel, H // stride, W // stride), out.shape

    # bf16 MXU path vs f32 reference -> loosened tolerance.
    ref = encoder_forward_ref(x, params)
    if not jnp.allclose(out, ref, rtol=3e-2, atol=3e-2):
        err = float(jnp.max(jnp.abs(out - ref)))
        raise AssertionError(f"Pallas encoder does not match JAX reference "
                             f"(max abs err {err:.4e})")

    print("KERNEL_OK")
</pallas_src>

<mosaic_0001>
module attributes {stable_mosaic.version = 11 : i64} {
  func.func @_conv_mm_kernel(%arg0: i32, %arg1: memref<128x128xbf16, #tpu.memory_space<vmem>>, %arg2: memref<128x128xbf16, #tpu.memory_space<vmem>>, %arg3: memref<1x128xf32, #tpu.memory_space<vmem>>, %arg4: memref<128x128xbf16, #tpu.memory_space<vmem>>) attributes {dimension_semantics = [#tpu.dimension_semantics<parallel>], iteration_bounds = array<i64: 1>, scalar_prefetch = 0 : i64, scratch_operands = 0 : i64, tpu.core_type = #tpu.core_type<tc>, window_params = [{transform_indices = @transform_0, window_bounds = array<i64: 128, 128>}, {pipeline_mode = #tpu.pipeline_mode<synchronous>, transform_indices = @transform_1, window_bounds = array<i64: 128, 128>}, {pipeline_mode = #tpu.pipeline_mode<synchronous>, transform_indices = @transform_2, window_bounds = array<i64: 1, 128>}, {transform_indices = @transform_3, window_bounds = array<i64: 128, 128>}]} {
    %c0 = arith.constant 0 : index
    %c0_0 = arith.constant 0 : index
    %0 = vector.load %arg1[%c0, %c0_0] : memref<128x128xbf16, #tpu.memory_space<vmem>>, vector<128x128xbf16>
    %c0_1 = arith.constant 0 : index
    %c0_2 = arith.constant 0 : index
    %1 = vector.load %arg2[%c0_1, %c0_2] : memref<128x128xbf16, #tpu.memory_space<vmem>>, vector<128x128xbf16>
    %cst = arith.constant dense<0.000000e+00> : vector<128x128xf32>
    %2 = tpu.matmul %0, %1, %cst {dimension_numbers = #tpu.dot_dimension_numbers<[1], [0], [0], [1], [0, 0, 1, 1], [], []>} : vector<128x128xbf16>, vector<128x128xbf16>, vector<128x128xf32> -> vector<128x128xf32>
    %c0_3 = arith.constant 0 : index
    %c0_4 = arith.constant 0 : index
    %3 = vector.load %arg3[%c0_3, %c0_4] : memref<1x128xf32, #tpu.memory_space<vmem>>, vector<1x128xf32>
    %4 = vector.broadcast %3 : vector<1x128xf32> to vector<128x128xf32>
    %5 = arith.addf %2, %4 : vector<128x128xf32>
    %cst_5 = arith.constant 0.000000e+00 : f32
    %6 = vector.broadcast %cst_5 : f32 to vector<128x128xf32>
    %7 = arith.maximumf %5, %6 : vector<128x128xf32>
    %8 = arith.truncf %7 : vector<128x128xf32> to vector<128x128xbf16>
    %c0_6 = arith.constant 0 : index
    %c0_7 = arith.constant 0 : index
    %9 = vector.load %arg4[%c0_6, %c0_7] : memref<128x128xbf16, #tpu.memory_space<vmem>>, vector<128x128xbf16>
    tpu.vector_store %arg4[%c0_6, %c0_7], %8 {strides = array<i32>} : memref<128x128xbf16, #tpu.memory_space<vmem>>, vector<128x128xbf16>,
    return
  }
  func.func @transform_0(%arg0: i32) -> (i32, i32) {
    %c0_i32 = arith.constant 0 : i32
    %c0_i32_0 = arith.constant 0 : i32
    return %arg0, %c0_i32 : i32, i32
  }
  func.func @transform_1(%arg0: i32) -> (i32, i32) {
    %c0_i32 = arith.constant 0 : i32
    %c0_i32_0 = arith.constant 0 : i32
    %c0_i32_1 = arith.constant 0 : i32
    return %c0_i32, %c0_i32_0 : i32, i32
  }
  func.func @transform_2(%arg0: i32) -> (i32, i32) {
    %c0_i32 = arith.constant 0 : i32
    %c0_i32_0 = arith.constant 0 : i32
    %c0_i32_1 = arith.constant 0 : i32
    return %c0_i32, %c0_i32_0 : i32, i32
  }
  func.func @transform_3(%arg0: i32) -> (i32, i32) {
    %c0_i32 = arith.constant 0 : i32
    %c0_i32_0 = arith.constant 0 : i32
    return %arg0, %c0_i32 : i32, i32
  }
}

</mosaic_0001>

<bundles_post_ra>
// kernel: tpu_custom_call.1
= control target key start
LH: loop header
LB: loop body
LE: loop exit
PB: predicated region body
PF: predicated region fallthrough
CT: control target
= control target key end

     0   :  { %8 = vsyncpa [#allocation3], 0  ;;  %s577_s0 = inlined_call_operand.hbm [shape: bf16[128,128], index: 0, kind: input, shape index: {}]   ;;  %s578_s1 = inlined_call_operand.hbm [shape: bf16[128,128], index: 1, kind: input, shape index: {}]   ;;  %s579_s2 = inlined_call_operand.vmem [shape: f32[1,128], index: 2, kind: input, shape index: {}]   ;;  %s580_s3 = inlined_call_operand.hbm [shape: bf16[128,128], index: 3, kind: output, shape index: {}]  }
   0x1   :  { %9 = vsyncpa [#allocation6], 0 }
   0x2   :  { %10 = vsyncpa [#allocation4], 0  ;;  %s15_s14 = sshll.u32 %s577_s0, 4  ;;  %s531_s15 = smov [#allocation2]   ;;  %s16_s14 = int_to_ptr.hbm [resolvable:$true] %s15_s14 }
   0x3   :  { %s17_s16 = sshll.u32 %s531_s15, 4  ;;  %s28_s19 = sshll.u32 %s578_s1, 4  ;;  %s18_s16 = int_to_ptr.vmem [resolvable:$true] %s17_s16  ;;  %s29_s19 = int_to_ptr.hbm [resolvable:$true] %s28_s19 }
   0x4   :  { %s532_s20 = smov 64   ;;  %s533_s21 = smov 4  }
   0x5   :  { %23 = dma.hbm_to_vmem [thread:$0]  %s16_s14, 1024, %s18_s16, [#allocation3], %s532_s20, %s532_s20, %s533_s21  }
   0x6   :  { %s534_s22 = smov [#allocation5]  }
   0x7   :  { %s30_s23 = sshll.u32 %s534_s22, 4  ;;  %s31_s23 = int_to_ptr.vmem [resolvable:$true] %s30_s23 }
   0x8   :  { %36 = dma.hbm_to_vmem [thread:$0]  %s29_s19, 1024, %s31_s23, [#allocation6], %s532_s20, %s532_s20, %s533_s21  }
   0x9   :  { %525 = dma.done.wait [#allocation3], 1024  }
   0xa   :  { %526 = vsyncadd [#allocation3], 4294966272 }
   0xb   :  { %527 = dma.done.wait [#allocation6], 1024  }
   0xc   :  { %528 = vsyncadd [#allocation6], 4294966272  ;;  %v375_v0 = vld [vmem:[#allocation5 + $0x38] sm:$0xff]  ;;  %v374_v1 = vld [vmem:[#allocation5 + $0x30] sm:$0xff]  ;;  %s282_s27 = sshll.u32 %s580_s3, 4  ;;  %s283_s27 = int_to_ptr.hbm [resolvable:$true] %s282_s27 }
   0xd   :  { %179 = vmatpush.bf16.msra.mxu0 %v375_v0  ;;  %423 = vmatpush.bf16.msra.mxu1 %v375_v0  ;;  %v373_v2 = vld [vmem:[#allocation5 + $0x28] sm:$0xff]  ;;  %v372_v3 = vld [vmem:[#allocation5 + $0x20] sm:$0xff]  ;;  %v371_v4 = vld [vmem:[#allocation5 + $0x18] sm:$0xff] }
   0xe   :  { %424 = vmatpush.bf16.msra.mxu2 %v375_v0  ;;  %425 = vmatpush.bf16.msra.mxu3 %v375_v0  ;;  %v370_v5 = vld [vmem:[#allocation5 + $0x10] sm:$0xff]  ;;  %v369_v6 = vld [vmem:[#allocation5 + $0x8] sm:$0xff]  ;;  %v368_v7 = vld [vmem:[#allocation5] sm:$0xff] }
   0xf   :  { %v360_v8 = vld [vmem:[#allocation2] sm:$0xff]  ;;  %v362_v9 = vld [vmem:[#allocation2 + $0x10] sm:$0xff]  ;;  %v361_v12 = vld [vmem:[#allocation2 + $0x8] sm:$0xff] }
  0x10   :  { %v364_v10 = vld [vmem:[#allocation2 + $0x20] sm:$0xff]  ;;  %v366_v11 = vld [vmem:[#allocation2 + $0x30] sm:$0xff]  ;;  %v363_v13 = vld [vmem:[#allocation2 + $0x18] sm:$0xff] }
  0x11   :  { %180 = vmatpush.bf16.msra.mxu0 %v374_v1  ;;  %426 = vmatpush.bf16.msra.mxu1 %v374_v1  ;;  %v365_v14 = vld [vmem:[#allocation2 + $0x28] sm:$0xff]  ;;  %v367_v15 = vld [vmem:[#allocation2 + $0x38] sm:$0xff]  ;;  %v452_v18 = vld [vmem:[%s579_s2] ss:$0 sm:$0xff]  ;;  %s535_s2 = smov [#allocation7]  }
  0x12   :  { %427 = vmatpush.bf16.msra.mxu2 %v374_v1  ;;  %428 = vmatpush.bf16.msra.mxu3 %v374_v1  ;;  %s280_s24 = sshll.u32 %s535_s2, 4  ;;  %s281_s24 = int_to_ptr.vmem [resolvable:$true] %s280_s24 }
  0x15   :  { %181 = vmatpush.bf16.msra.mxu0 %v373_v2  ;;  %429 = vmatpush.bf16.msra.mxu1 %v373_v2 }
  0x16   :  { %430 = vmatpush.bf16.msra.mxu2 %v373_v2  ;;  %431 = vmatpush.bf16.msra.mxu3 %v373_v2 }
  0x19   :  { %182 = vmatpush.bf16.msra.mxu0 %v372_v3  ;;  %432 = vmatpush.bf16.msra.mxu1 %v372_v3 }
  0x1a   :  { %433 = vmatpush.bf16.msra.mxu2 %v372_v3  ;;  %434 = vmatpush.bf16.msra.mxu3 %v372_v3 }
  0x1d   :  { %183 = vmatpush.bf16.msra.mxu0 %v371_v4  ;;  %435 = vmatpush.bf16.msra.mxu1 %v371_v4 }
  0x1e   :  { %436 = vmatpush.bf16.msra.mxu2 %v371_v4  ;;  %437 = vmatpush.bf16.msra.mxu3 %v371_v4 }
  0x21   :  { %184 = vmatpush.bf16.msra.mxu0 %v370_v5  ;;  %438 = vmatpush.bf16.msra.mxu1 %v370_v5 }
  0x22   :  { %439 = vmatpush.bf16.msra.mxu2 %v370_v5  ;;  %440 = vmatpush.bf16.msra.mxu3 %v370_v5 }
  0x25   :  { %185 = vmatpush.bf16.msra.mxu0 %v369_v6  ;;  %441 = vmatpush.bf16.msra.mxu1 %v369_v6 }
  0x26   :  { %442 = vmatpush.bf16.msra.mxu2 %v369_v6  ;;  %443 = vmatpush.bf16.msra.mxu3 %v369_v6 }
  0x29   :  { %186 = vmatpush.bf16.msra.mxu0 %v368_v7  ;;  %444 = vmatpush.bf16.msra.mxu1 %v368_v7 }
  0x2a   :  { %445 = vmatpush.bf16.msra.mxu2 %v368_v7  ;;  %446 = vmatpush.bf16.msra.mxu3 %v368_v7 }
  0x2c   :  { %187 = vmatmul.bf16.vlgmr.msra.gmra.mxu0 %v360_v8  ;;  %197 = vmatmul.bf16.vlgmr.msra.gmra.mxu1 %v362_v9 }
  0x2d   :  { %207 = vmatmul.bf16.vlgmr.msra.gmra.mxu2 %v364_v10  ;;  %217 = vmatmul.bf16.vlgmr.msra.gmra.mxu3 %v366_v11 }
  0x3c   :  { %192 = vmatmul.bf16.gmra.mxu0 %v361_v12  ;;  %202 = vmatmul.bf16.gmra.mxu1 %v363_v13 }
  0x3d   :  { %212 = vmatmul.bf16.gmra.mxu2 %v365_v14  ;;  %222 = vmatmul.bf16.gmra.mxu3 %v367_v15 }
  0xa9   :  { %v188_v16 = vpop.f32.mrf.mxu0  ;;  %v198_v17 = vpop.f32.mrf.mxu1 }
  0xaa   :  { %v189_v19 = vadd.f32 %v452_v18, %v188_v16  ;;  %v199_v20 = vadd.f32 %v452_v18, %v198_v17 }
  0xac   :  { %v228_v27 = vmax.f32 %v189_v19, 0.0  ;;  %v232_v28 = vmax.f32 %v199_v20, 0.0 }
  0xb0   :  { %v208_v21 = vpop.f32.mrf.mxu2  ;;  %v218_v22 = vpop.f32.mrf.mxu3 }
  0xb1   :  { %v190_v23 = vpop.f32.mrf.mxu0  ;;  %v200_v24 = vpop.f32.mrf.mxu1  ;;  %v209_v33 = vadd.f32 %v452_v18, %v208_v21  ;;  %v219_v34 = vadd.f32 %v452_v18, %v218_v22 }
  0xb2   :  { %v191_v25 = vadd.f32 %v452_v18, %v190_v23  ;;  %v201_v26 = vadd.f32 %v452_v18, %v200_v24 }
  0xb3   :  { %v236_v41 = vmax.f32 %v209_v33, 0.0  ;;  %v240_v42 = vmax.f32 %v219_v34, 0.0 }
  0xb4   :  { %v229_v29 = vmax.f32 %v191_v25, 0.0  ;;  %v233_v30 = vmax.f32 %v201_v26, 0.0 }
  0xb6   :  { %v379_v31 = vpack.c.bf16 %v229_v29, %v228_v27  ;;  %v389_v32 = vpack.c.bf16 %v233_v30, %v232_v28 }
  0xb8   :  { %380 = vst [vmem:[#allocation7] sm:$0xff] %v379_v31   ;;  %v210_v35 = vpop.f32.mrf.mxu2  ;;  %v220_v36 = vpop.f32.mrf.mxu3 }
  0xb9   :  { %417 = vst [vmem:[#allocation7 + $0x10] sm:$0xff] %v389_v32   ;;  %v211_v37 = vadd.f32 %v452_v18, %v210_v35  ;;  %v221_v38 = vadd.f32 %v452_v18, %v220_v36  ;;  %v193_v39 = vpop.f32.mrf.mxu0  ;;  %v203_v40 = vpop.f32.mrf.mxu1 }
  0xba   :  { %v194_v47 = vadd.f32 %v452_v18, %v193_v39  ;;  %v204_v48 = vadd.f32 %v452_v18, %v203_v40 }
  0xbb   :  { %v237_v43 = vmax.f32 %v211_v37, 0.0  ;;  %v241_v44 = vmax.f32 %v221_v38, 0.0 }
  0xbc   :  { %v230_v55 = vmax.f32 %v194_v47, 0.0  ;;  %v234_v56 = vmax.f32 %v204_v48, 0.0 }
  0xbd   :  { %v399_v45 = vpack.c.bf16 %v237_v43, %v236_v41  ;;  %v409_v46 = vpack.c.bf16 %v241_v44, %v240_v42 }
  0xbf   :  { %419 = vst [vmem:[#allocation7 + $0x20] sm:$0xff] %v399_v45  }
  0xc0   :  { %421 = vst [vmem:[#allocation7 + $0x30] sm:$0xff] %v409_v46   ;;  %v213_v49 = vpop.f32.mrf.mxu2  ;;  %v223_v50 = vpop.f32.mrf.mxu3 }
  0xc1   :  { %v195_v51 = vpop.f32.mrf.mxu0  ;;  %v205_v52 = vpop.f32.mrf.mxu1  ;;  %v214_v61 = vadd.f32 %v452_v18, %v213_v49  ;;  %v224_v62 = vadd.f32 %v452_v18, %v223_v50 }
  0xc2   :  { %v196_v53 = vadd.f32 %v452_v18, %v195_v51  ;;  %v206_v54 = vadd.f32 %v452_v18, %v205_v52 }
  0xc3   :  { %v238_v3 = vmax.f32 %v214_v61, 0.0  ;;  %v242_v4 = vmax.f32 %v224_v62, 0.0 }
  0xc4   :  { %v231_v57 = vmax.f32 %v196_v53, 0.0  ;;  %v235_v58 = vmax.f32 %v206_v54, 0.0 }
  0xc6   :  { %v384_v59 = vpack.c.bf16 %v231_v57, %v230_v55  ;;  %v394_v60 = vpack.c.bf16 %v235_v58, %v234_v56 }
  0xc8   :  { %416 = vst [vmem:[#allocation7 + $0x8] sm:$0xff] %v384_v59   ;;  %v215_v63 = vpop.f32.mrf.mxu2  ;;  %v225_v0 = vpop.f32.mrf.mxu3 }
  0xc9   :  { %418 = vst [vmem:[#allocation7 + $0x18] sm:$0xff] %v394_v60   ;;  %v216_v1 = vadd.f32 %v452_v18, %v215_v63  ;;  %v226_v2 = vadd.f32 %v452_v18, %v225_v0 }
  0xcb   :  { %v239_v5 = vmax.f32 %v216_v1, 0.0  ;;  %v243_v6 = vmax.f32 %v226_v2, 0.0 }
  0xcd   :  { %v404_v7 = vpack.c.bf16 %v239_v5, %v238_v3  ;;  %v414_v8 = vpack.c.bf16 %v243_v6, %v242_v4 }
  0xcf   :  { %420 = vst [vmem:[#allocation7 + $0x28] sm:$0xff] %v404_v7  }
  0xd0   :  { %422 = vst [vmem:[#allocation7 + $0x38] sm:$0xff] %v414_v8  }
  0xd1   :  { %288 = dma.vmem_to_hbm [thread:$0]  %s281_s24, 1024, %s283_s27, [#allocation4], %s532_s20, %s532_s20, %s533_s21  }
  0xd2   :  { %529 = dma.done.wait [#allocation4], 1024  }
  0xd3   :  { %530 = vsyncadd [#allocation4], 4294966272 }
  0xd4   :  { %293 = vsyncpa [#allocation3], 1 }
  0xd5   :  { %294 = vsyncpa [#allocation6], 1 }
  0xd6   :  { %295 = vsyncpa [#allocation4], 1 }

</bundles_post_ra>
